<compile_context>
chip_gen: v5e
topology: v5e:2x2
jax: 0.10.0
libtpu: 0.0.40
codegen_flags: <defaults>
</compile_context>

<pallas_src>
import jax
import jax.numpy as jnp
from jax.experimental import pallas as pl
from jax.experimental.pallas import tpu as pltpu

MAX_BITS = 16
LANES = 8 * MAX_BITS      # 128: one packed output row = 8 batch rows x 16 bits
ROW_ALIGN = 64            # tb % 64 == 0 -> x block and (tb//8, 128) out block align


def _round_up(n, m):
    return ((n + m - 1) // m) * m


def _arch_config():
    """(max rows per grid step, prefer >=2 blocks, vmem limit) per TPU generation."""
    try:
        kind = jax.devices()[0].device_kind.lower()
    except Exception:
        kind = ""
    if "v5" in kind or "v6" in kind:
        # 128 MiB VMEM, one TensorCore: big blocks amortize per-step overhead.
        return 4096, False, 64 * 1024 * 1024
    # v7x (64 MiB VMEM, 2 TensorCores) and unknown chips: smaller blocks and ask
    # for >= 2 grid steps so the "parallel" axis can be sharded across cores.
    return 2048, True, 32 * 1024 * 1024


def zeckendorf_kernel(x_ref, mask_ref, w1_ref, b1_ref, w2_ref, b2_ref,
                      w34_ref, b34_ref, w5_ref, b5_ref, out_ref):
    x = x_ref[...]                                        # (TB, 1) f32
    tb = x.shape[0]
    rows = tb // 8                                        # packed output rows

    # Encoder layer 1: Linear(1, 64).  K == 1 -> VPU broadcast, not an MXU matmul.
    h = jnp.maximum(x * w1_ref[...] + b1_ref[...], 0.0)                  # (TB, 64)

    # Encoder layer 2: Linear(64, 128) + ReLU (MXU, bf16 inputs, f32 accumulation).
    h = jnp.dot(h.astype(jnp.bfloat16), w2_ref[...],
                preferred_element_type=jnp.float32) + b2_ref[...]
    h = jnp.maximum(h, 0.0)                                              # (TB, 128)

    # Encoder layer 3 (no activation) + decoder layer 1, fused to one 128x128 matmul:
    # relu((h@W3 + b3)@W4 + b4) == relu(h@(W3@W4) + (b3@W4 + b4)).
    h = jnp.dot(h.astype(jnp.bfloat16), w34_ref[...],
                preferred_element_type=jnp.float32) + b34_ref[...]
    h = jnp.maximum(h, 0.0)                                              # (TB, 128)

    # Decoder layer 2: Linear(128, 16).  Bias is added after lane packing (8x cheaper).
    logits = jnp.dot(h.astype(jnp.bfloat16), w5_ref[...],
                     preferred_element_type=jnp.float32)                 # (TB, 16)

    # Lane-dense tail: pack 8 batch rows per 128-lane row so sigmoid / penalty /
    # store run fully lane-occupied instead of 16/128.
    #   packed[p, 16*g + j] = logits[g*rows + p, j]
    # (the wrapper pre-permutes x rows so this flattens back to batch order for free).
    packed = jnp.concatenate(
        [logits[g * rows:(g + 1) * rows, :] for g in range(8)], axis=1)  # (rows, 128)
    logits_p = packed + b5_ref[...]

    # sigmoid(z) = 0.5 * tanh(0.5*z) + 0.5 : a single EUP transcendental per element.
    probs = 0.5 * jnp.tanh(0.5 * logits_p) + 0.5

    # phi constraint Conv1d(1, 1, k=2, weight=1): detector[:, j] = p[j] + p[j+1].
    # "shifted" moves probs left by one lane; mask_ref zeroes bit MAX_BITS-1 of every
    # 16-lane group so batch rows never bleed into each other and the last bit keeps a
    # zero penalty (matches the zero padding of `penalty_expanded` in PyTorch).
    shifted = jnp.concatenate(
        [probs[:, 1:], jnp.zeros_like(probs[:, :1])], axis=1) * mask_ref[...]
    penalty = jnp.maximum(probs + shifted - 1.5, 0.0)
    out_ref[...] = jnp.clip(probs - 0.5 * penalty, 0.0, 1.0)


def init_params(key):
    """Deterministic PyTorch-Linear-style init; weights in (in, out) layout."""
    dims = [(1, 64), (64, 128), (128, 256), (256, 128), (128, MAX_BITS)]
    params = []
    for d_in, d_out in dims:
        key, kw, kb = jax.random.split(key, 3)
        bound = 1.0 / (d_in ** 0.5)
        w = jax.random.uniform(kw, (d_in, d_out), jnp.float32, -bound, bound)
        b = jax.random.uniform(kb, (1, d_out), jnp.float32, -bound, bound)
        params += [w, b]
    return params


def zeckendorf_forward(x, params):
    w1, b1, w2, b2, w3, b3, w4, b4, w5, b5 = params

    # --- weight prep: fuse layers 3-4 in f32, cast MXU-facing weights to bf16 once ---
    w34 = jnp.dot(w3, w4, preferred_element_type=jnp.float32)            # (128, 128)
    b34 = jnp.dot(b3, w4, preferred_element_type=jnp.float32) + b4       # (1, 128)
    w2b, w34b, w5b = (w.astype(jnp.bfloat16) for w in (w2, w34, w5))
    b5p = jnp.tile(b5, (1, 8))                                           # (1, 128)
    mask = (jnp.arange(LANES) % MAX_BITS != MAX_BITS - 1)
    mask = mask.astype(jnp.float32)[None, :]                             # (1, 128)

    # --- batch tiling (generation aware, balanced blocks) ---
    b = x.shape[0]
    tb_max, want_two_blocks, vmem_bytes = _arch_config()
    nb = max(2 if (want_two_blocks and b >= 2 * ROW_ALIGN) else 1, pl.cdiv(b, tb_max))
    tb = min(tb_max, _round_up(pl.cdiv(b, nb), ROW_ALIGN))
    nb = pl.cdiv(b, tb)
    bp = nb * tb
    rows = tb // 8

    xp = jnp.pad(x, ((0, bp - b), (0, 0))) if bp != b else x
    # Pre-permute rows inside each block so the kernel's lane-packed output, reshaped
    # row-major to (bp, MAX_BITS), is already in original batch order (x is 4 B/row,
    # so this is far cheaper than transposing the 64 B/row output afterwards).
    xp = xp.reshape(nb, rows, 8, 1).transpose(0, 2, 1, 3).reshape(bp, 1)

    def resident(a):  # whole array, same block every step -> stays VMEM-resident
        return pl.BlockSpec(a.shape, lambda i: (0, 0))

    consts = (mask, w1, b1, w2b, b2, w34b, b34, w5b, b5p)
    in_specs = [pl.BlockSpec((tb, 1), lambda i: (i, 0))]
    in_specs += [resident(a) for a in consts]
    out_specs = pl.BlockSpec((rows, LANES), lambda i: (i, 0))

    macs_per_row = 64 + 64 * 128 + 128 * 128 + 128 * MAX_BITS            # post-fusion
    cost = pl.CostEstimate(
        flops=int(2 * bp * macs_per_row + 10 * bp * MAX_BITS),
        transcendentals=int(bp * MAX_BITS),
        bytes_accessed=int(xp.nbytes + bp * MAX_BITS * 4
                           + sum(int(a.nbytes) for a in consts)))

    out = pl.pallas_call(
        zeckendorf_kernel,
        out_shape=jax.ShapeDtypeStruct((bp // 8, LANES), jnp.float32),
        grid=(nb,),
        in_specs=in_specs,
        out_specs=out_specs,
        compiler_params=pltpu.CompilerParams(
            dimension_semantics=("parallel",),
            vmem_limit_bytes=vmem_bytes),
        cost_estimate=cost,
    )(xp, *consts)

    out = out.reshape(bp, MAX_BITS)                                      # free reshape
    return out[:b] if bp != b else out


def zeckendorf_forward_ref(x, params):
    """Pure-JAX reference with matching precision (fused 3-4, bf16 MXU inputs, f32 acc)."""
    w1, b1, w2, b2, w3, b3, w4, b4, w5, b5 = params
    bf = jnp.bfloat16
    w34 = jnp.dot(w3, w4, preferred_element_type=jnp.float32)
    b34 = jnp.dot(b3, w4, preferred_element_type=jnp.float32) + b4
    h = jnp.maximum(x * w1 + b1, 0.0)
    h = jnp.maximum(jnp.dot(h.astype(bf), w2.astype(bf),
                            preferred_element_type=jnp.float32) + b2, 0.0)
    h = jnp.maximum(jnp.dot(h.astype(bf), w34.astype(bf),
                            preferred_element_type=jnp.float32) + b34, 0.0)
    logits = jnp.dot(h.astype(bf), w5.astype(bf),
                     preferred_element_type=jnp.float32) + b5
    probs = jax.nn.sigmoid(logits)
    detector = probs[:, :-1] + probs[:, 1:]            # Conv1d(k=2, weight=1)
    penalty = jnp.maximum(detector - 1.5, 0.0)
    penalty_expanded = jnp.pad(penalty, ((0, 0), (0, 1)))
    return jnp.clip(probs - 0.5 * penalty_expanded, 0.0, 1.0)


if __name__ == "__main__":
    key = jax.random.PRNGKey(0)
    key, k_params, k_x = jax.random.split(key, 3)
    params = init_params(k_params)

    # batch=8: aligned; batch=5: ragged (padding path); batch=130: multi-row packing
    # (and, on v7x, two grid blocks across both TensorCores).
    for batch in (8, 5, 130):
        kx = jax.random.fold_in(k_x, batch)
        x = jax.random.uniform(kx, (batch, 1), jnp.float32) * 100.0
        out = jax.block_until_ready(zeckendorf_forward(x, params))
        ref = zeckendorf_forward_ref(x, params)
        assert out.shape == (batch, MAX_BITS)
        assert jnp.allclose(out, ref, atol=2e-3, rtol=2e-3), f"mismatch at batch={batch}"

    print("KERNEL_OK")
</pallas_src>

<mosaic_0001>
module attributes {stable_mosaic.version = 11 : i64} {
  func.func @zeckendorf_kernel(%arg0: i32, %arg1: memref<64x1xf32, #tpu.memory_space<vmem>>, %arg2: memref<1x128xf32, #tpu.memory_space<vmem>>, %arg3: memref<1x64xf32, #tpu.memory_space<vmem>>, %arg4: memref<1x64xf32, #tpu.memory_space<vmem>>, %arg5: memref<64x128xbf16, #tpu.memory_space<vmem>>, %arg6: memref<1x128xf32, #tpu.memory_space<vmem>>, %arg7: memref<128x128xbf16, #tpu.memory_space<vmem>>, %arg8: memref<1x128xf32, #tpu.memory_space<vmem>>, %arg9: memref<128x16xbf16, #tpu.memory_space<vmem>>, %arg10: memref<1x128xf32, #tpu.memory_space<vmem>>, %arg11: memref<8x128xf32, #tpu.memory_space<vmem>>) attributes {dimension_semantics = [#tpu.dimension_semantics<parallel>], iteration_bounds = array<i64: 1>, scalar_prefetch = 0 : i64, scratch_operands = 0 : i64, tpu.core_type = #tpu.core_type<tc>, window_params = [{transform_indices = @transform_0, window_bounds = array<i64: 64, 1>}, {pipeline_mode = #tpu.pipeline_mode<synchronous>, transform_indices = @transform_1, window_bounds = array<i64: 1, 128>}, {pipeline_mode = #tpu.pipeline_mode<synchronous>, transform_indices = @transform_2, window_bounds = array<i64: 1, 64>}, {pipeline_mode = #tpu.pipeline_mode<synchronous>, transform_indices = @transform_3, window_bounds = array<i64: 1, 64>}, {pipeline_mode = #tpu.pipeline_mode<synchronous>, transform_indices = @transform_4, window_bounds = array<i64: 64, 128>}, {pipeline_mode = #tpu.pipeline_mode<synchronous>, transform_indices = @transform_5, window_bounds = array<i64: 1, 128>}, {pipeline_mode = #tpu.pipeline_mode<synchronous>, transform_indices = @transform_6, window_bounds = array<i64: 128, 128>}, {pipeline_mode = #tpu.pipeline_mode<synchronous>, transform_indices = @transform_7, window_bounds = array<i64: 1, 128>}, {pipeline_mode = #tpu.pipeline_mode<synchronous>, transform_indices = @transform_8, window_bounds = array<i64: 128, 16>}, {pipeline_mode = #tpu.pipeline_mode<synchronous>, transform_indices = @transform_9, window_bounds = array<i64: 1, 128>}, {transform_indices = @transform_10, window_bounds = array<i64: 8, 128>}]} {
    %c0 = arith.constant 0 : index
    %c0_0 = arith.constant 0 : index
    %0 = vector.load %arg1[%c0, %c0_0] : memref<64x1xf32, #tpu.memory_space<vmem>>, vector<64x1xf32>
    %c0_1 = arith.constant 0 : index
    %c0_2 = arith.constant 0 : index
    %1 = vector.load %arg3[%c0_1, %c0_2] : memref<1x64xf32, #tpu.memory_space<vmem>>, vector<1x64xf32>
    %2 = vector.broadcast %0 : vector<64x1xf32> to vector<64x64xf32>
    %3 = vector.broadcast %1 : vector<1x64xf32> to vector<64x64xf32>
    %4 = arith.mulf %2, %3 : vector<64x64xf32>
    %c0_3 = arith.constant 0 : index
    %c0_4 = arith.constant 0 : index
    %5 = vector.load %arg4[%c0_3, %c0_4] : memref<1x64xf32, #tpu.memory_space<vmem>>, vector<1x64xf32>
    %6 = vector.broadcast %5 : vector<1x64xf32> to vector<64x64xf32>
    %7 = arith.addf %4, %6 : vector<64x64xf32>
    %cst = arith.constant 0.000000e+00 : f32
    %8 = vector.broadcast %cst : f32 to vector<64x64xf32>
    %9 = arith.maximumf %7, %8 : vector<64x64xf32>
    %10 = arith.truncf %9 : vector<64x64xf32> to vector<64x64xbf16>
    %c0_5 = arith.constant 0 : index
    %c0_6 = arith.constant 0 : index
    %11 = vector.load %arg5[%c0_5, %c0_6] : memref<64x128xbf16, #tpu.memory_space<vmem>>, vector<64x128xbf16>
    %cst_7 = arith.constant dense<0.000000e+00> : vector<64x128xf32>
    %12 = tpu.matmul %10, %11, %cst_7 {dimension_numbers = #tpu.dot_dimension_numbers<[1], [0], [0], [1], [0, 0, 1, 1], [], []>} : vector<64x64xbf16>, vector<64x128xbf16>, vector<64x128xf32> -> vector<64x128xf32>
    %c0_8 = arith.constant 0 : index
    %c0_9 = arith.constant 0 : index
    %13 = vector.load %arg6[%c0_8, %c0_9] : memref<1x128xf32, #tpu.memory_space<vmem>>, vector<1x128xf32>
    %14 = vector.broadcast %13 : vector<1x128xf32> to vector<64x128xf32>
    %15 = arith.addf %12, %14 : vector<64x128xf32>
    %cst_10 = arith.constant 0.000000e+00 : f32
    %16 = vector.broadcast %cst_10 : f32 to vector<64x128xf32>
    %17 = arith.maximumf %15, %16 : vector<64x128xf32>
    %18 = arith.truncf %17 : vector<64x128xf32> to vector<64x128xbf16>
    %c0_11 = arith.constant 0 : index
    %c0_12 = arith.constant 0 : index
    %19 = vector.load %arg7[%c0_11, %c0_12] : memref<128x128xbf16, #tpu.memory_space<vmem>>, vector<128x128xbf16>
    %cst_13 = arith.constant dense<0.000000e+00> : vector<64x128xf32>
    %20 = tpu.matmul %18, %19, %cst_13 {dimension_numbers = #tpu.dot_dimension_numbers<[1], [0], [0], [1], [0, 0, 1, 1], [], []>} : vector<64x128xbf16>, vector<128x128xbf16>, vector<64x128xf32> -> vector<64x128xf32>
    %c0_14 = arith.constant 0 : index
    %c0_15 = arith.constant 0 : index
    %21 = vector.load %arg8[%c0_14, %c0_15] : memref<1x128xf32, #tpu.memory_space<vmem>>, vector<1x128xf32>
    %22 = vector.broadcast %21 : vector<1x128xf32> to vector<64x128xf32>
    %23 = arith.addf %20, %22 : vector<64x128xf32>
    %cst_16 = arith.constant 0.000000e+00 : f32
    %24 = vector.broadcast %cst_16 : f32 to vector<64x128xf32>
    %25 = arith.maximumf %23, %24 : vector<64x128xf32>
    %26 = arith.truncf %25 : vector<64x128xf32> to vector<64x128xbf16>
    %c0_17 = arith.constant 0 : index
    %c0_18 = arith.constant 0 : index
    %27 = vector.load %arg9[%c0_17, %c0_18] : memref<128x16xbf16, #tpu.memory_space<vmem>>, vector<128x16xbf16>
    %cst_19 = arith.constant dense<0.000000e+00> : vector<64x16xf32>
    %28 = tpu.matmul %26, %27, %cst_19 {dimension_numbers = #tpu.dot_dimension_numbers<[1], [0], [0], [1], [0, 0, 1, 1], [], []>} : vector<64x128xbf16>, vector<128x16xbf16>, vector<64x16xf32> -> vector<64x16xf32>
    %29 = vector.extract_strided_slice %28 {offsets = [0, 0], sizes = [8, 16], strides = [1, 1]} : vector<64x16xf32> to vector<8x16xf32>
    %30 = vector.extract_strided_slice %28 {offsets = [8, 0], sizes = [8, 16], strides = [1, 1]} : vector<64x16xf32> to vector<8x16xf32>
    %31 = vector.extract_strided_slice %28 {offsets = [16, 0], sizes = [8, 16], strides = [1, 1]} : vector<64x16xf32> to vector<8x16xf32>
    %32 = vector.extract_strided_slice %28 {offsets = [24, 0], sizes = [8, 16], strides = [1, 1]} : vector<64x16xf32> to vector<8x16xf32>
    %33 = vector.extract_strided_slice %28 {offsets = [32, 0], sizes = [8, 16], strides = [1, 1]} : vector<64x16xf32> to vector<8x16xf32>
    %34 = vector.extract_strided_slice %28 {offsets = [40, 0], sizes = [8, 16], strides = [1, 1]} : vector<64x16xf32> to vector<8x16xf32>
    %35 = vector.extract_strided_slice %28 {offsets = [48, 0], sizes = [8, 16], strides = [1, 1]} : vector<64x16xf32> to vector<8x16xf32>
    %36 = vector.extract_strided_slice %28 {offsets = [56, 0], sizes = [8, 16], strides = [1, 1]} : vector<64x16xf32> to vector<8x16xf32>
    %37 = tpu.concatenate %29, %30, %31, %32, %33, %34, %35, %36 in 1 : vector<8x16xf32>, vector<8x16xf32>, vector<8x16xf32>, vector<8x16xf32>, vector<8x16xf32>, vector<8x16xf32>, vector<8x16xf32>, vector<8x16xf32> -> vector<8x128xf32>
    %c0_20 = arith.constant 0 : index
    %c0_21 = arith.constant 0 : index
    %38 = vector.load %arg10[%c0_20, %c0_21] : memref<1x128xf32, #tpu.memory_space<vmem>>, vector<1x128xf32>
    %39 = vector.broadcast %38 : vector<1x128xf32> to vector<8x128xf32>
    %40 = arith.addf %37, %39 : vector<8x128xf32>
    %cst_22 = arith.constant 5.000000e-01 : f32
    %41 = vector.broadcast %cst_22 : f32 to vector<8x128xf32>
    %42 = arith.mulf %41, %40 : vector<8x128xf32>
    %43 = math.tanh %42 : vector<8x128xf32>
    %cst_23 = arith.constant 5.000000e-01 : f32
    %44 = vector.broadcast %cst_23 : f32 to vector<8x128xf32>
    %45 = arith.mulf %44, %43 : vector<8x128xf32>
    %cst_24 = arith.constant 5.000000e-01 : f32
    %46 = vector.broadcast %cst_24 : f32 to vector<8x128xf32>
    %47 = arith.addf %45, %46 : vector<8x128xf32>
    %48 = vector.extract_strided_slice %47 {offsets = [0, 1], sizes = [8, 127], strides = [1, 1]} : vector<8x128xf32> to vector<8x127xf32>
    %cst_25 = arith.constant 0.000000e+00 : f32
    %49 = vector.broadcast %cst_25 : f32 to vector<8x1xf32>
    %50 = tpu.concatenate %48, %49 in 1 : vector<8x127xf32>, vector<8x1xf32> -> vector<8x128xf32>
    %c0_26 = arith.constant 0 : index
    %c0_27 = arith.constant 0 : index
    %51 = vector.load %arg2[%c0_26, %c0_27] : memref<1x128xf32, #tpu.memory_space<vmem>>, vector<1x128xf32>
    %52 = vector.broadcast %51 : vector<1x128xf32> to vector<8x128xf32>
    %53 = arith.mulf %50, %52 : vector<8x128xf32>
    %54 = arith.addf %47, %53 : vector<8x128xf32>
    %cst_28 = arith.constant 1.500000e+00 : f32
    %55 = vector.broadcast %cst_28 : f32 to vector<8x128xf32>
    %56 = arith.subf %54, %55 : vector<8x128xf32>
    %cst_29 = arith.constant 0.000000e+00 : f32
    %57 = vector.broadcast %cst_29 : f32 to vector<8x128xf32>
    %58 = arith.maximumf %56, %57 : vector<8x128xf32>
    %cst_30 = arith.constant 5.000000e-01 : f32
    %59 = vector.broadcast %cst_30 : f32 to vector<8x128xf32>
    %60 = arith.mulf %59, %58 : vector<8x128xf32>
    %61 = arith.subf %47, %60 : vector<8x128xf32>
    %cst_31 = arith.constant 0.000000e+00 : f32
    %cst_32 = arith.constant 1.000000e+00 : f32
    %62 = vector.broadcast %cst_31 : f32 to vector<8x128xf32>
    %63 = arith.maximumf %62, %61 : vector<8x128xf32>
    %64 = vector.broadcast %cst_32 : f32 to vector<8x128xf32>
    %65 = arith.minimumf %64, %63 : vector<8x128xf32>
    %c0_33 = arith.constant 0 : index
    %c0_34 = arith.constant 0 : index
    %66 = vector.load %arg11[%c0_33, %c0_34] : memref<8x128xf32, #tpu.memory_space<vmem>>, vector<8x128xf32>
    tpu.vector_store %arg11[%c0_33, %c0_34], %65 {strides = array<i32>} : memref<8x128xf32, #tpu.memory_space<vmem>>, vector<8x128xf32>,
    return
  }
  func.func @transform_0(%arg0: i32) -> (i32, i32) {
    %c0_i32 = arith.constant 0 : i32
    %c0_i32_0 = arith.constant 0 : i32
    return %arg0, %c0_i32 : i32, i32
  }
  func.func @transform_1(%arg0: i32) -> (i32, i32) {
    %c0_i32 = arith.constant 0 : i32
    %c0_i32_0 = arith.constant 0 : i32
    %c0_i32_1 = arith.constant 0 : i32
    return %c0_i32, %c0_i32_0 : i32, i32
  }
  func.func @transform_2(%arg0: i32) -> (i32, i32) {
    %c0_i32 = arith.constant 0 : i32
    %c0_i32_0 = arith.constant 0 : i32
    %c0_i32_1 = arith.constant 0 : i32
    return %c0_i32, %c0_i32_0 : i32, i32
  }
  func.func @transform_3(%arg0: i32) -> (i32, i32) {
    %c0_i32 = arith.constant 0 : i32
    %c0_i32_0 = arith.constant 0 : i32
    %c0_i32_1 = arith.constant 0 : i32
    return %c0_i32, %c0_i32_0 : i32, i32
  }
  func.func @transform_4(%arg0: i32) -> (i32, i32) {
    %c0_i32 = arith.constant 0 : i32
    %c0_i32_0 = arith.constant 0 : i32
    %c0_i32_1 = arith.constant 0 : i32
    return %c0_i32, %c0_i32_0 : i32, i32
  }
  func.func @transform_5(%arg0: i32) -> (i32, i32) {
    %c0_i32 = arith.constant 0 : i32
    %c0_i32_0 = arith.constant 0 : i32
    %c0_i32_1 = arith.constant 0 : i32
    return %c0_i32, %c0_i32_0 : i32, i32
  }
  func.func @transform_6(%arg0: i32) -> (i32, i32) {
    %c0_i32 = arith.constant 0 : i32
    %c0_i32_0 = arith.constant 0 : i32
    %c0_i32_1 = arith.constant 0 : i32
    return %c0_i32, %c0_i32_0 : i32, i32
  }
  func.func @transform_7(%arg0: i32) -> (i32, i32) {
    %c0_i32 = arith.constant 0 : i32
    %c0_i32_0 = arith.constant 0 : i32
    %c0_i32_1 = arith.constant 0 : i32
    return %c0_i32, %c0_i32_0 : i32, i32
  }
  func.func @transform_8(%arg0: i32) -> (i32, i32) {
    %c0_i32 = arith.constant 0 : i32
    %c0_i32_0 = arith.constant 0 : i32
    %c0_i32_1 = arith.constant 0 : i32
    return %c0_i32, %c0_i32_0 : i32, i32
  }
  func.func @transform_9(%arg0: i32) -> (i32, i32) {
    %c0_i32 = arith.constant 0 : i32
    %c0_i32_0 = arith.constant 0 : i32
    %c0_i32_1 = arith.constant 0 : i32
    return %c0_i32, %c0_i32_0 : i32, i32
  }
  func.func @transform_10(%arg0: i32) -> (i32, i32) {
    %c0_i32 = arith.constant 0 : i32
    %c0_i32_0 = arith.constant 0 : i32
    return %arg0, %c0_i32 : i32, i32
  }
}

</mosaic_0001>

<bundles_post_ra>
// kernel: tpu_custom_call.1
= control target key start
LH: loop header
LB: loop body
LE: loop exit
PB: predicated region body
PF: predicated region fallthrough
CT: control target
= control target key end

     0   :  { %v666_v2 = vmov 0   ;;  %s841_s0 = inlined_call_operand.vmem [shape: f32[64,1], index: 0, kind: input, shape index: {}]   ;;  %s842_s1 = inlined_call_operand.vmem [shape: f32[1,128], index: 1, kind: input, shape index: {}]   ;;  %s843_s2 = inlined_call_operand.vmem [shape: f32[1,64], index: 2, kind: input, shape index: {}]   ;;  %s844_s3 = inlined_call_operand.vmem [shape: f32[1,64], index: 3, kind: input, shape index: {}]   ;;  %s845_s4 = inlined_call_operand.vmem [shape: bf16[64,128], index: 4, kind: input, shape index: {}]   ;;  %s846_s5 = inlined_call_operand.vmem [shape: f32[1,128], index: 5, kind: input, shape index: {}]   ;;  %s847_s6 = inlined_call_operand.vmem [shape: bf16[128,128], index: 6, kind: input, shape index: {}]   ;;  %s848_s7 = inlined_call_operand.vmem [shape: f32[1,128], index: 7, kind: input, shape index: {}]   ;;  %s849_s8 = inlined_call_operand.vmem [shape: bf16[128,16], index: 8, kind: input, shape index: {}]   ;;  %s850_s9 = inlined_call_operand.vmem [shape: f32[1,128], index: 9, kind: input, shape index: {}]   ;;  %s851_s10 = inlined_call_operand.hbm [shape: f32[8,128], index: 10, kind: output, shape index: {}]  }
   0x1   :  { %v39_v0 = vld [vmem:[%s841_s0 + $0x10] sm:$0xff]  ;;  %v37_v1 = vld [vmem:[%s841_s0] sm:$0xff]  ;;  %630 = vset.pattern.permute.xlu1 %v666_v2  ;;  %629 = vset.pattern.permute.xlu0 %v666_v2 }
   0x2   :  { %58 = vperm.xlu1 %630, %v39_v0   ;;  %48 = vperm.xlu0 %629, %v37_v1   ;;  %v41_v3 = vld [vmem:[%s841_s0 + $0x20] sm:$0xff] }
   0x3   :  { %631 = vset.pattern.permute.xlu2 %v666_v2 }
   0x4   :  { %68 = vperm.xlu2 %631, %v41_v3  }
   0x5   :  { %15 = vsyncpa [#allocation3], 0  ;;  %v40_v4 = vld [vmem:[%s841_s0 + $0x18] sm:$0xff]  ;;  %v38_v5 = vld [vmem:[%s841_s0 + $0x8] sm:$0xff]  ;;  %vm157_vm0 = vcmask 523264   ;;  %s669_s27 = smov 48  }
   0x6   :  { %v42_v6 = vld [vmem:[%s841_s0 + $0x28] sm:$0xff]  ;;  %v44_v7 = vld [vmem:[%s841_s0 + $0x38] sm:$0xff]  ;;  %v43_v8 = vld [vmem:[%s841_s0 + $0x30] sm:$0xff]  ;;  %s670_s28 = smov 64   ;;  %s671_s29 = smov 80   ;;  %vm441_vm1 = vcmask 130048  }
   0x7   :  { %v586_v9 = vld [vmem:[%s845_s4 + $0x18] sm:$0xff]  ;;  %v585_v10 = vld [vmem:[%s845_s4 + $0x10] sm:$0xff]  ;;  %v584_v11 = vld [vmem:[%s845_s4 + $0x8] sm:$0xff]  ;;  %s672_s30 = smov 96   ;;  %s673_s11 = smov 112   ;;  %vm443_vm2 = vcmask 261120  }
   0x8   :  { %174 = vmatpush.bf16.msra.mxu0 %v586_v9  ;;  %v583_v12 = vld [vmem:[%s845_s4] sm:$0xff]  ;;  %v594_v35 = vld [vmem:[%s847_s6 + $0x38] sm:$0xff]  ;;  %v593_v38 = vld [vmem:[%s847_s6 + $0x30] sm:$0xff]  ;;  %vm445_vm3 = vcmask 392192   ;;  %vm448_vm4 = vcmask 654336   ;;  %vm450_vm5 = vcmask 785408  }
   0x9   :  { %v632_v14 = vld [vmem:[%s843_s2] ss:$0 sm:$0xff]  ;;  %279 = vmatpush.bf16.msra.mxu1 %v594_v35  ;;  %603 = vmatpush.bf16.msra.mxu3 %v594_v35  ;;  %v592_v41 = vld [vmem:[%s847_s6 + $0x28] sm:$0xff]  ;;  %v590_v55 = vld [vmem:[%s847_s6 + $0x18] sm:$0xff]  ;;  %vm452_vm6 = vcmask 916480   ;;  %s674_s14 = smov 127  }
   0xa   :  { %63 = vperm.xlu1 %630, %v40_v4   ;;  %53 = vperm.xlu0 %629, %v38_v5   ;;  %v633_v15 = vld [vmem:[%s844_s3] ss:$0 sm:$0xff]  ;;  %v589_v56 = vld [vmem:[%s847_s6 + $0x10] sm:$0xff]  ;;  %v588_v57 = vld [vmem:[%s847_s6 + $0x8] sm:$0xff]  ;;  %vm467_vm7 = vcmask 1039360   ;;  %s489_s17 = sshll.u32 %s851_s10, 4  ;;  %s490_s17 = int_to_ptr.hbm [resolvable:$true] %s489_s17 }
   0xb   :  { %v591_v44 = vld [vmem:[%s847_s6 + $0x20] sm:$0xff] }
   0xc   :  { %73 = vperm.xlu2 %631, %v42_v6   ;;  %175 = vmatpush.bf16.msra.mxu0 %v585_v10  ;;  %v587_v58 = vld [vmem:[%s847_s6] sm:$0xff]  ;;  %v602_v10 = vld [vmem:[%s849_s8 + $0x38] sm:$0xff] }
   0xd   :  { %280 = vmatpush.bf16.msra.mxu1 %v593_v38  ;;  %604 = vmatpush.bf16.msra.mxu3 %v593_v38  ;;  %v634_v60 = vld [vmem:[%s846_s5] ss:$0 sm:$0xff] }
   0xe   :  { %611 = vmatpush.bf16.msra.mxu2 %v602_v10 }
  0x10   :  { %176 = vmatpush.bf16.msra.mxu0 %v584_v11 }
  0x11   :  { %281 = vmatpush.bf16.msra.mxu1 %v592_v41  ;;  %605 = vmatpush.bf16.msra.mxu3 %v592_v41 }
  0x12   :  { %83 = vperm.xlu1 %630, %v44_v7   ;;  %78 = vperm.xlu0 %629, %v43_v8  }
  0x14   :  { %177 = vmatpush.bf16.msra.mxu0 %v583_v12  ;;  %v601_v12 = vld [vmem:[%s849_s8 + $0x30] sm:$0xff] }
  0x15   :  { %282 = vmatpush.bf16.msra.mxu1 %v591_v44  ;;  %606 = vmatpush.bf16.msra.mxu3 %v591_v44 }
  0x16   :  { %612 = vmatpush.bf16.msra.mxu2 %v601_v12 }
  0x19   :  { %283 = vmatpush.bf16.msra.mxu1 %v590_v55  ;;  %607 = vmatpush.bf16.msra.mxu3 %v590_v55 }
  0x1d   :  { %284 = vmatpush.bf16.msra.mxu1 %v589_v56  ;;  %608 = vmatpush.bf16.msra.mxu3 %v589_v56 }
  0x21   :  { %285 = vmatpush.bf16.msra.mxu1 %v588_v57  ;;  %609 = vmatpush.bf16.msra.mxu3 %v588_v57 }
  0x25   :  { %286 = vmatpush.bf16.msra.mxu1 %v587_v58  ;;  %610 = vmatpush.bf16.msra.mxu3 %v587_v58 }
  0x29   :  { %384 = vmatpush.bf16.msrb.mxu1 %v602_v10 }
  0x2d   :  { %385 = vmatpush.bf16.msrb.mxu1 %v601_v12 }
  0x5e   :  { %v69_v28 = vpop.permute.xlu2 %68 }
  0x5f   :  { %v93_v36 = vmul.f32 %v632_v14, %v69_v28  ;;  %v598_v28 = vld [vmem:[%s849_s8 + $0x18] sm:$0xff] }
  0x61   :  { %v105_v39 = vadd.f32 %v633_v15, %v93_v36 }
  0x63   :  { %v113_v42 = vmax.f32 %v105_v39, 0.0 }
  0x66   :  { %v74_v34 = vpop.permute.xlu2 %73 }
  0x67   :  { %v94_v37 = vmul.f32 %v632_v14, %v74_v34 }
  0x69   :  { %v106_v40 = vadd.f32 %v633_v15, %v94_v37 }
  0x6b   :  { %v114_v43 = vmax.f32 %v106_v40, 0.0 }
  0x6d   :  { %v119_v45 = vpack.c.bf16 %v114_v43, %v113_v42 }
  0x74   :  { %v49_v13 = vpop.permute.xlu0 %48  ;;  %v59_v17 = vpop.permute.xlu1 %58 }
  0x75   :  { %v89_v16 = vmul.f32 %v632_v14, %v49_v13  ;;  %v91_v26 = vmul.f32 %v632_v14, %v59_v17  ;;  %v600_v13 = vld [vmem:[%s849_s8 + $0x28] sm:$0xff]  ;;  %v599_v17 = vld [vmem:[%s849_s8 + $0x20] sm:$0xff] }
  0x76   :  { %386 = vmatpush.bf16.msrb.mxu1 %v600_v13  ;;  %613 = vmatpush.bf16.msra.mxu2 %v600_v13 }
  0x77   :  { %v101_v19 = vadd.f32 %v633_v15, %v89_v16  ;;  %v103_v29 = vadd.f32 %v633_v15, %v91_v26 }
  0x79   :  { %v109_v22 = vmax.f32 %v101_v19, 0.0  ;;  %v111_v31 = vmax.f32 %v103_v29, 0.0  ;;  %v597_v29 = vld [vmem:[%s849_s8 + $0x10] sm:$0xff] }
  0x7a   :  { %387 = vmatpush.bf16.msrb.mxu1 %v599_v17  ;;  %614 = vmatpush.bf16.msra.mxu2 %v599_v17 }
  0x7c   :  { %v54_v18 = vpop.permute.xlu0 %53  ;;  %v64_v25 = vpop.permute.xlu1 %63 }
  0x7d   :  { %v90_v20 = vmul.f32 %v632_v14, %v54_v18  ;;  %v92_v27 = vmul.f32 %v632_v14, %v64_v25 }
  0x7e   :  { %388 = vmatpush.bf16.msrb.mxu1 %v598_v28  ;;  %615 = vmatpush.bf16.msra.mxu2 %v598_v28 }
  0x7f   :  { %v102_v21 = vadd.f32 %v633_v15, %v90_v20  ;;  %v104_v30 = vadd.f32 %v633_v15, %v92_v27 }
  0x81   :  { %v110_v23 = vmax.f32 %v102_v21, 0.0  ;;  %v112_v32 = vmax.f32 %v104_v30, 0.0  ;;  %v596_v30 = vld [vmem:[%s849_s8 + $0x8] sm:$0xff] }
  0x82   :  { %389 = vmatpush.bf16.msrb.mxu1 %v597_v29  ;;  %616 = vmatpush.bf16.msra.mxu2 %v597_v29 }
  0x83   :  { %v117_v24 = vpack.c.bf16 %v110_v23, %v109_v22  ;;  %v118_v33 = vpack.c.bf16 %v112_v32, %v111_v31  ;;  %v595_v31 = vld [vmem:[%s849_s8] sm:$0xff]  ;;  %s668_s8 = smov 32  }
  0x84   :  { %v84_v46 = vpop.permute.xlu1 %83  ;;  %v79_v47 = vpop.permute.xlu0 %78 }
  0x85   :  { %514 = vmatmul.msk.bf16.vlgmr.msra.gmra.mxu0 %vm157_vm0, %v117_v24  ;;  %v96_v48 = vmul.f32 %v632_v14, %v84_v46  ;;  %v95_v49 = vmul.f32 %v632_v14, %v79_v47 }
  0x86   :  { %390 = vmatpush.bf16.msrb.mxu1 %v596_v30  ;;  %617 = vmatpush.bf16.msra.mxu2 %v596_v30 }
  0x87   :  { %v108_v50 = vadd.f32 %v633_v15, %v96_v48  ;;  %v107_v51 = vadd.f32 %v633_v15, %v95_v49 }
  0x89   :  { %v116_v52 = vmax.f32 %v108_v50, 0.0  ;;  %v115_v53 = vmax.f32 %v107_v51, 0.0 }
  0x8a   :  { %391 = vmatpush.bf16.msrb.mxu1 %v595_v31  ;;  %618 = vmatpush.bf16.msra.mxu2 %v595_v31 }
  0x8b   :  { %v120_v54 = vpack.c.bf16 %v116_v52, %v115_v53 }
  0x95   :  { %515 = vmatmul.msk.bf16.gmra.mxu0 %vm157_vm0, %v118_v33  ;;  %v635_v33 = vld [vmem:[%s848_s7] ss:$0 sm:$0xff]  ;;  %s667_s7 = smov 16  }
  0xa5   :  { %516 = vmatmul.msk.bf16.gmra.mxu0 %vm157_vm0, %v119_v45 }
  0xb5   :  { %517 = vmatmul.msk.bf16.gmra.mxu0 %vm157_vm0, %v120_v54 }
 0x102   :  { %v179_v59 = vpop.f32.mrf.mxu0 }
 0x103   :  { %v180_v61 = vadd.f32 %v634_v60, %v179_v59 }
 0x105   :  { %v199_v0 = vmax.f32 %v180_v61, 0.0 }
 0x10a   :  { %v181_v62 = vpop.f32.mrf.mxu0 }
 0x10b   :  { %v182_v63 = vadd.f32 %v634_v60, %v181_v62 }
 0x10d   :  { %v200_v1 = vmax.f32 %v182_v63, 0.0 }
 0x10f   :  { %v207_v2 = vpack.c.bf16 %v200_v1, %v199_v0 }
 0x111   :  { %287 = vmatmul.bf16.vlgmr.msra.gmra.mxu1 %v207_v2 }
 0x112   :  { %v184_v3 = vpop.f32.mrf.mxu0 }
 0x113   :  { %v185_v4 = vadd.f32 %v634_v60, %v184_v3 }
 0x115   :  { %v201_v7 = vmax.f32 %v185_v4, 0.0 }
 0x11a   :  { %v186_v5 = vpop.f32.mrf.mxu0 }
 0x11b   :  { %v187_v6 = vadd.f32 %v634_v60, %v186_v5 }
 0x11d   :  { %v202_v8 = vmax.f32 %v187_v6, 0.0 }
 0x11f   :  { %v208_v9 = vpack.c.bf16 %v202_v8, %v201_v7 }
 0x121   :  { %292 = vmatmul.bf16.vlgmr.msra.gmra.mxu3 %v208_v9 }
 0x122   :  { %v189_v11 = vpop.f32.mrf.mxu0 }
 0x123   :  { %v190_v14 = vadd.f32 %v634_v60, %v189_v11 }
 0x125   :  { %v203_v18 = vmax.f32 %v190_v14, 0.0  ;;  %v636_v14 = vld [vmem:[%s850_s9] ss:$0 sm:$0xff]  ;;  %s675_s9 = smov [#allocation2]  }
 0x126   :  { %s487_s5 = sshll.u32 %s675_s9, 4  ;;  %s488_s5 = int_to_ptr.vmem [resolvable:$true] %s487_s5 }
 0x12a   :  { %v191_v15 = vpop.f32.mrf.mxu0 }
 0x12b   :  { %v192_v16 = vadd.f32 %v634_v60, %v191_v15 }
 0x12d   :  { %v204_v19 = vmax.f32 %v192_v16, 0.0 }
 0x12f   :  { %v209_v20 = vpack.c.bf16 %v204_v19, %v203_v18 }
 0x131   :  { %297 = vmatmul.bf16.gmra.mxu3 %v209_v20 }
 0x132   :  { %v194_v21 = vpop.f32.mrf.mxu0 }
 0x133   :  { %v195_v22 = vadd.f32 %v634_v60, %v194_v21 }
 0x135   :  { %v205_v25 = vmax.f32 %v195_v22, 0.0 }
 0x13a   :  { %v196_v23 = vpop.f32.mrf.mxu0 }
 0x13b   :  { %v197_v24 = vadd.f32 %v634_v60, %v196_v23 }
 0x13d   :  { %v206_v26 = vmax.f32 %v197_v24, 0.0 }
 0x13f   :  { %v210_v27 = vpack.c.bf16 %v206_v26, %v205_v25  ;;  %v637_v25 = vld [vmem:[%s842_s1] ss:$0 sm:$0xff] }
 0x141   :  { %302 = vmatmul.bf16.gmra.mxu3 %v210_v27 }
 0x18e   :  { %v288_v32 = vpop.f32.mrf.mxu1 }
 0x18f   :  { %v289_v34 = vadd.f32 %v635_v33, %v288_v32 }
 0x191   :  { %v308_v37 = vmax.f32 %v289_v34, 0.0 }
 0x196   :  { %v290_v35 = vpop.f32.mrf.mxu1 }
 0x197   :  { %v291_v36 = vadd.f32 %v635_v33, %v290_v35 }
 0x199   :  { %v309_v38 = vmax.f32 %v291_v36, 0.0 }
 0x19b   :  { %v316_v39 = vpack.c.bf16 %v309_v38, %v308_v37 }
 0x19d   :  { %392 = vmatmul.bf16.vlgmr.msrb.gmra.mxu1 %v316_v39 }
 0x1a4   :  { %v293_v40 = vpop.f32.mrf.mxu3 }
 0x1a5   :  { %v294_v41 = vadd.f32 %v635_v33, %v293_v40 }
 0x1a7   :  { %v310_v44 = vmax.f32 %v294_v41, 0.0 }
 0x1ac   :  { %v295_v42 = vpop.f32.mrf.mxu3 }
 0x1ad   :  { %v296_v43 = vadd.f32 %v635_v33, %v295_v42 }
 0x1af   :  { %v311_v45 = vmax.f32 %v296_v43, 0.0 }
 0x1b1   :  { %v317_v46 = vpack.c.bf16 %v311_v45, %v310_v44 }
 0x1b3   :  { %397 = vmatmul.bf16.vlgmr.msra.gmra.mxu2 %v317_v46 }
 0x1b4   :  { %v298_v47 = vpop.f32.mrf.mxu3 }
 0x1b5   :  { %v299_v48 = vadd.f32 %v635_v33, %v298_v47 }
 0x1b7   :  { %v312_v51 = vmax.f32 %v299_v48, 0.0 }
 0x1bc   :  { %v300_v49 = vpop.f32.mrf.mxu3 }
 0x1bd   :  { %v301_v50 = vadd.f32 %v635_v33, %v300_v49 }
 0x1bf   :  { %v313_v52 = vmax.f32 %v301_v50, 0.0 }
 0x1c1   :  { %v318_v53 = vpack.c.bf16 %v313_v52, %v312_v51 }
 0x1c3   :  { %402 = vmatmul.bf16.gmra.mxu2 %v318_v53 }
 0x1c4   :  { %v303_v54 = vpop.f32.mrf.mxu3 }
 0x1c5   :  { %v304_v55 = vadd.f32 %v635_v33, %v303_v54 }
 0x1c7   :  { %v314_v58 = vmax.f32 %v304_v55, 0.0 }
 0x1cc   :  { %v305_v56 = vpop.f32.mrf.mxu3 }
 0x1cd   :  { %v306_v57 = vadd.f32 %v635_v33, %v305_v56 }
 0x1cf   :  { %v315_v59 = vmax.f32 %v306_v57, 0.0 }
 0x1d1   :  { %v319_v60 = vpack.c.bf16 %v315_v59, %v314_v58 }
 0x1d3   :  { %407 = vmatmul.bf16.gmra.mxu2 %v319_v60 }
 0x21a   :  { %v393_v61 = vpop.f32.mrf.mxu1 }
 0x222   :  { %v395_v62 = vpop.f32.mrf.mxu1 }
 0x223   :  { %414 = vrot.lane.b32.xlu2 %v395_v62, %s667_s7 }
 0x236   :  { %v398_v63 = vpop.f32.mrf.mxu2 }
 0x237   :  { %418 = vrot.lane.b32.xlu0 %v398_v63, %s668_s8 }
 0x23e   :  { %v400_v0 = vpop.f32.mrf.mxu2 }
 0x23f   :  { %422 = vrot.lane.b32.xlu1 %v400_v0, %s669_s27 }
 0x246   :  { %v403_v1 = vpop.f32.mrf.mxu2 }
 0x247   :  { %426 = vrot.lane.b32.xlu2 %v403_v1, %s670_s28 }
 0x24e   :  { %v405_v2 = vpop.f32.mrf.mxu2 }
 0x24f   :  { %430 = vrot.lane.b32.xlu0 %v405_v2, %s671_s29 }
 0x256   :  { %v408_v3 = vpop.f32.mrf.mxu2 }
 0x257   :  { %434 = vrot.lane.b32.xlu1 %v408_v3, %s672_s30 }
 0x25e   :  { %v410_v4 = vpop.f32.mrf.mxu2 }
 0x25f   :  { %438 = vrot.lane.b32.xlu2 %v410_v4, %s673_s11 }
 0x27d   :  { %v415_v5 = vpop.permute.xlu2 %414 }
 0x27e   :  { %v442_v9 = vsel %vm441_vm1, %v393_v61, %v415_v5 }
 0x2a1   :  { %v427_v8 = vpop.permute.xlu2 %426 }
 0x2a9   :  { %v419_v6 = vpop.permute.xlu0 %418 }
 0x2aa   :  { %v444_v10 = vsel %vm443_vm2, %v442_v9, %v419_v6 }
 0x2b1   :  { %v423_v7 = vpop.permute.xlu1 %422 }
 0x2b2   :  { %v446_v11 = vsel %vm445_vm3, %v444_v10, %v423_v7 }
 0x2b3   :  { %v447_v13 = vsel %vm157_vm0, %v446_v11, %v427_v8 }
 0x2b9   :  { %v439_v17 = vpop.permute.xlu2 %438 }
 0x2c1   :  { %v431_v12 = vpop.permute.xlu0 %430 }
 0x2c2   :  { %v449_v15 = vsel %vm448_vm4, %v447_v13, %v431_v12 }
 0x2c9   :  { %v435_v16 = vpop.permute.xlu1 %434 }
 0x2ca   :  { %v451_v18 = vsel %vm450_vm5, %v449_v15, %v435_v16 }
 0x2cb   :  { %v453_v19 = vsel %vm452_vm6, %v451_v18, %v439_v17 }
 0x2cc   :  { %v458_v20 = vadd.f32 %v636_v14, %v453_v19 }
 0x2ce   :  { %v459_v21 = vmul.f32 0.5, %v458_v20 }
 0x2d0   :  { %638 = vtanh.f32 %v459_v21 }
 0x2d6   :  { %v639_v22 = vpop.eup %638 }
 0x2d7   :  { %v461_v23 = vmul.f32 0.5, %v639_v22 }
 0x2d9   :  { %v462_v24 = vadd.f32 0.5, %v461_v23 }
 0x2db   :  { %464 = vrot.lane.b32.xlu0 %v462_v24, %s674_s14 }
 0x34d   :  { %v465_v26 = vpop.permute.xlu0 %464 }
 0x34e   :  { %v468_v27 = vsel %vm467_vm7, %v465_v26, 0.0 }
 0x34f   :  { %v473_v28 = vmul.f32 %v637_v25, %v468_v27 }
 0x351   :  { %v474_v29 = vadd.f32 %v473_v28, %v462_v24 }
 0x353   :  { %v582_v30 = vadd.f32 -1.5, %v474_v29 }
 0x355   :  { %v476_v31 = vmax.f32 %v582_v30, 0.0 }
 0x357   :  { %v477_v32 = vmul.f32 0.5, %v476_v31 }
 0x359   :  { %v478_v33 = vsub.f32 %v462_v24, %v477_v32 }
 0x35b   :  { %v479_v34 = vmax.f32 %v478_v33, 0.0 }
 0x35d   :  { %v480_v35 = vmin.f32 %v479_v34, 1.0 }
 0x35f   :  { %481 = vst [vmem:[#allocation2] sm:$0xff] %v480_v35 }
 0x360   :  { %492 = dma.vmem_to_hbm [thread:$0]  %s488_s5, 128, %s490_s17, [#allocation3]  }
 0x361   :  { %664 = dma.done.wait [#allocation3], 128  }
 0x362   :  { %665 = vsyncadd [#allocation3], 4294967168 }
 0x363   :  { %497 = vsyncpa [#allocation3], 1 }

</bundles_post_ra>
